<compile_context>
chip_gen: v7x
topology: tpu7x:2x2x1
jax: 0.10.0
libtpu: 0.0.40
codegen_flags: <defaults>
</compile_context>

<pallas_src>
import jax
import jax.numpy as jnp
from jax.experimental import pallas as pl
from jax.experimental.pallas import tpu as pltpu

HIDDEN = 64                      # true hidden width of the module
H_PAD = 128                      # lane-dense padded hidden width
BLOCK_N = 128                    # node tile (rows of A / reduction blocks)
G_PAD = 8                        # sublane-padded graph count for pooling
DROP_P = 0.2                     # F.dropout(x, p=0.2) -> training=True default
KEEP_THRESH = int((1.0 - DROP_P) * float(2 ** 32))   # uint32 dropout threshold
VMEM_LIMIT = 48 * 1024 * 1024    # explicit scoped-VMEM budget (safe on v7x 64MiB)


def _round_up(x, m):
    return ((x + m - 1) // m) * m


# --------------------------- GCNConv layer kernel ---------------------------

def gcn_layer_kernel(a_ref, x_ref, w_ref, b_ref, o_ref, acc_ref):
    """acc[i] += A[i,k] @ (X[k] @ W); finalize o[i] = relu(acc[i] + b)."""
    k = pl.program_id(1)

    @pl.when(k == 0)
    def _():
        acc_ref[...] = jnp.zeros_like(acc_ref)

    # X[k] @ W is a skinny matmul (K = in_channels, only 4 for layer 1); cheap
    # relative to the 128x128 A-tile matmul, so recomputing it per row block
    # is acceptable.  # TODO(synk): for huge grids, hoist X@W into its own pass.
    xw = jnp.dot(x_ref[...], w_ref[...], preferred_element_type=jnp.float32)
    acc_ref[...] += jnp.dot(a_ref[...], xw.astype(jnp.bfloat16),
                            preferred_element_type=jnp.float32)

    @pl.when(k == pl.num_programs(1) - 1)
    def _():
        o_ref[...] = jnp.maximum(acc_ref[...] + b_ref[...], 0.0)


def gcn_conv(a_hat_bf16, x_bf16, w_bf16, b_f32, *, block=BLOCK_N):
    n_pad = a_hat_bf16.shape[0]
    c_in = x_bf16.shape[1]
    h = w_bf16.shape[1]
    nblk = n_pad // block
    return pl.pallas_call(
        gcn_layer_kernel,
        out_shape=jax.ShapeDtypeStruct((n_pad, h), jnp.float32),
        grid_spec=pltpu.PrefetchScalarGridSpec(
            num_scalar_prefetch=0,
            grid=(nblk, nblk),
            in_specs=[
                pl.BlockSpec((block, block), lambda i, k: (i, k)),  # A_hat tile
                pl.BlockSpec((block, c_in), lambda i, k: (k, 0)),   # X rows (k)
                pl.BlockSpec((c_in, h), lambda i, k: (0, 0)),       # W resident
                pl.BlockSpec((1, h), lambda i, k: (0, 0)),          # bias
            ],
            out_specs=pl.BlockSpec((block, h), lambda i, k: (i, 0)),
            scratch_shapes=[pltpu.VMEM((block, h), jnp.float32)],
        ),
        compiler_params=pltpu.CompilerParams(
            dimension_semantics=("parallel", "arbitrary"),
            vmem_limit_bytes=VMEM_LIMIT,
        ),
    )(a_hat_bf16, x_bf16, w_bf16, b_f32)


# -------------------- dropout + global_mean_pool kernel ---------------------

def dropout_pool_kernel(h_ref, bits_ref, p_ref, o_ref, acc_ref):
    """acc += P[:, k] @ dropout(H2[k]); finalize o = acc."""
    k = pl.program_id(0)

    @pl.when(k == 0)
    def _():
        acc_ref[...] = jnp.zeros_like(acc_ref)

    keep = bits_ref[...] < jnp.uint32(KEEP_THRESH)        # integer threshold
    h = jnp.where(keep, h_ref[...] * (1.0 / (1.0 - DROP_P)), 0.0)
    acc_ref[...] += jnp.dot(p_ref[...], h, preferred_element_type=jnp.float32)

    @pl.when(k == pl.num_programs(0) - 1)
    def _():
        o_ref[...] = acc_ref[...]


def mean_pool_dropout(h2_f32, drop_bits_u32, pool_mat_f32, *, block=BLOCK_N):
    n_pad, hdim = h2_f32.shape
    g = pool_mat_f32.shape[0]
    nblk = n_pad // block
    return pl.pallas_call(
        dropout_pool_kernel,
        out_shape=jax.ShapeDtypeStruct((g, hdim), jnp.float32),
        grid_spec=pltpu.PrefetchScalarGridSpec(
            num_scalar_prefetch=0,
            grid=(nblk,),
            in_specs=[
                pl.BlockSpec((block, hdim), lambda k: (k, 0)),   # H2 rows
                pl.BlockSpec((block, hdim), lambda k: (k, 0)),   # dropout bits
                pl.BlockSpec((g, block), lambda k: (0, k)),      # pool columns
            ],
            out_specs=pl.BlockSpec((g, hdim), lambda k: (0, 0)),
            scratch_shapes=[pltpu.VMEM((g, hdim), jnp.float32)],
        ),
        compiler_params=pltpu.CompilerParams(
            dimension_semantics=("arbitrary",),
            vmem_limit_bytes=VMEM_LIMIT,
        ),
    )(h2_f32, drop_bits_u32, pool_mat_f32)


# ------------------------------ full forward --------------------------------

def gcn_forward(a_hat, x, w1, b1, w2, b2, pool_mat, drop_bits, *, block=BLOCK_N):
    """All arrays already zero-padded: N -> N_PAD, hidden -> H_PAD, G -> G_PAD."""
    a_bf = a_hat.astype(jnp.bfloat16)
    h1 = gcn_conv(a_bf, x.astype(jnp.bfloat16), w1.astype(jnp.bfloat16), b1,
                  block=block)
    h2 = gcn_conv(a_bf, h1.astype(jnp.bfloat16), w2.astype(jnp.bfloat16), b2,
                  block=block)
    return mean_pool_dropout(h2, drop_bits, pool_mat, block=block)


# ------------------------- JAX glue (graph setup) ---------------------------

def build_normalized_adjacency(edge_index, num_nodes):
    """A_hat = D^-1/2 (A + I) D^-1/2 with A[dst, src] = 1 (aggregate src->dst)."""
    src, dst = edge_index[0], edge_index[1]
    adj = jnp.zeros((num_nodes, num_nodes), jnp.float32)
    adj = adj.at[dst, src].set(1.0)
    adj = jnp.maximum(adj, jnp.eye(num_nodes, dtype=jnp.float32))  # self loops
    deg = adj.sum(axis=1)
    dinv = jnp.where(deg > 0, jax.lax.rsqrt(deg), 0.0)
    return adj * dinv[:, None] * dinv[None, :]


def build_mean_pool_matrix(batch, num_graphs):
    onehot = (batch[None, :] == jnp.arange(num_graphs)[:, None]).astype(jnp.float32)
    counts = jnp.maximum(onehot.sum(axis=1, keepdims=True), 1.0)
    return onehot / counts


def init_params(key, in_channels):
    k1, k2 = jax.random.split(key, 2)
    s1 = (6.0 / (in_channels + HIDDEN)) ** 0.5
    s2 = (6.0 / (HIDDEN + HIDDEN)) ** 0.5
    w1 = jax.random.uniform(k1, (in_channels, HIDDEN), jnp.float32, -s1, s1)
    b1 = jnp.zeros((1, HIDDEN), jnp.float32)
    w2 = jax.random.uniform(k2, (HIDDEN, HIDDEN), jnp.float32, -s2, s2)
    b2 = jnp.zeros((1, HIDDEN), jnp.float32)
    return w1, b1, w2, b2


if __name__ == "__main__":
    key = jax.random.PRNGKey(0)
    N = 200          # nodes
    C = 4            # in_channels
    E = 600          # edges
    G = 2            # graphs in the batch

    k_x, k_e1, k_e2, k_w, k_d = jax.random.split(key, 5)
    x = jax.random.normal(k_x, (N, C), jnp.float32)
    edge_index = jnp.stack([
        jax.random.randint(k_e1, (E,), 0, N),
        jax.random.randint(k_e2, (E,), 0, N),
    ]).astype(jnp.int32)
    batch = jnp.concatenate([jnp.zeros(N // 2, jnp.int32),
                             jnp.ones(N - N // 2, jnp.int32)])

    w1, b1, w2, b2 = init_params(k_w, C)
    a_hat = build_normalized_adjacency(edge_index, N)
    pool_mat = build_mean_pool_matrix(batch, G)

    # ---- pad everything: N -> multiple of BLOCK_N, hidden 64 -> 128, G -> 8 ----
    N_PAD = _round_up(N, BLOCK_N)
    a_pad = jnp.zeros((N_PAD, N_PAD), jnp.float32).at[:N, :N].set(a_hat)
    x_pad = jnp.zeros((N_PAD, C), jnp.float32).at[:N].set(x)
    p_pad = jnp.zeros((G_PAD, N_PAD), jnp.float32).at[:G, :N].set(pool_mat)
    w1_pad = jnp.zeros((C, H_PAD), jnp.float32).at[:, :HIDDEN].set(w1)
    b1_pad = jnp.zeros((1, H_PAD), jnp.float32).at[:, :HIDDEN].set(b1)
    w2_pad = jnp.zeros((H_PAD, H_PAD), jnp.float32).at[:HIDDEN, :HIDDEN].set(w2)
    b2_pad = jnp.zeros((1, H_PAD), jnp.float32).at[:, :HIDDEN].set(b2)

    # Dropout randomness generated host/XLA-side (TPU HW PRNG does not lower in
    # interpret mode); each node-block tile consumes its own slice of bits.
    drop_bits = jax.random.bits(k_d, (N_PAD, H_PAD), dtype=jnp.uint32)

    out_pad = gcn_forward(a_pad, x_pad, w1_pad, b1_pad, w2_pad, b2_pad,
                          p_pad, drop_bits)
    out = out_pad[:G, :HIDDEN]
    jax.block_until_ready(out)
    assert out.shape == (G, HIDDEN) and out.dtype == jnp.float32
    assert bool(jnp.all(jnp.isfinite(out)))
    print("KERNEL_OK")
</pallas_src>

<mosaic_0001>
module attributes {stable_mosaic.version = 11 : i64} {
  func.func @gcn_layer_kernel(%arg0: i32, %arg1: i32, %arg2: memref<128x128xbf16, #tpu.memory_space<vmem>>, %arg3: memref<128x4xbf16, #tpu.memory_space<vmem>>, %arg4: memref<4x128xbf16, #tpu.memory_space<vmem>>, %arg5: memref<1x128xf32, #tpu.memory_space<vmem>>, %arg6: memref<128x128xf32, #tpu.memory_space<vmem>>, %arg7: memref<128x128xf32, #tpu.memory_space<vmem>>) attributes {dimension_semantics = [#tpu.dimension_semantics<parallel>, #tpu.dimension_semantics<arbitrary>], iteration_bounds = array<i64: 2, 2>, scalar_prefetch = 0 : i64, scratch_operands = 1 : i64, tpu.core_type = #tpu.core_type<tc>, window_params = [{transform_indices = @transform_0, window_bounds = array<i64: 128, 128>}, {transform_indices = @transform_1, window_bounds = array<i64: 128, 4>}, {pipeline_mode = #tpu.pipeline_mode<synchronous>, transform_indices = @transform_2, window_bounds = array<i64: 4, 128>}, {pipeline_mode = #tpu.pipeline_mode<synchronous>, transform_indices = @transform_3, window_bounds = array<i64: 1, 128>}, {transform_indices = @transform_4, window_bounds = array<i64: 128, 128>}]} {
    %c0_i32 = arith.constant 0 : i32
    %0 = arith.cmpi eq, %arg1, %c0_i32 : i32
    %1 = arith.extui %0 : i1 to i32
    %c0_i32_0 = arith.constant 0 : i32
    %2 = arith.cmpi ne, %1, %c0_i32_0 : i32
    scf.if %2 {
      %cst_12 = arith.constant 0.000000e+00 : f32
      %15 = vector.broadcast %cst_12 : f32 to vector<128x128xf32>
      %c0_13 = arith.constant 0 : index
      %c0_14 = arith.constant 0 : index
      %16 = vector.load %arg7[%c0_13, %c0_14] : memref<128x128xf32, #tpu.memory_space<vmem>>, vector<128x128xf32>
      tpu.vector_store %arg7[%c0_13, %c0_14], %15 {strides = array<i32>} : memref<128x128xf32, #tpu.memory_space<vmem>>, vector<128x128xf32>,
    } else {
    }
    %c0 = arith.constant 0 : index
    %c0_1 = arith.constant 0 : index
    %3 = vector.load %arg3[%c0, %c0_1] : memref<128x4xbf16, #tpu.memory_space<vmem>>, vector<128x4xbf16>
    %c0_2 = arith.constant 0 : index
    %c0_3 = arith.constant 0 : index
    %4 = vector.load %arg4[%c0_2, %c0_3] : memref<4x128xbf16, #tpu.memory_space<vmem>>, vector<4x128xbf16>
    %cst = arith.constant dense<0.000000e+00> : vector<128x128xf32>
    %5 = tpu.matmul %3, %4, %cst {dimension_numbers = #tpu.dot_dimension_numbers<[1], [0], [0], [1], [0, 0, 1, 1], [], []>} : vector<128x4xbf16>, vector<4x128xbf16>, vector<128x128xf32> -> vector<128x128xf32>
    %c0_4 = arith.constant 0 : index
    %c0_5 = arith.constant 0 : index
    %6 = vector.load %arg7[%c0_4, %c0_5] : memref<128x128xf32, #tpu.memory_space<vmem>>, vector<128x128xf32>
    %c0_6 = arith.constant 0 : index
    %c0_7 = arith.constant 0 : index
    %7 = vector.load %arg2[%c0_6, %c0_7] : memref<128x128xbf16, #tpu.memory_space<vmem>>, vector<128x128xbf16>
    %8 = arith.truncf %5 : vector<128x128xf32> to vector<128x128xbf16>
    %cst_8 = arith.constant dense<0.000000e+00> : vector<128x128xf32>
    %9 = tpu.matmul %7, %8, %cst_8 {dimension_numbers = #tpu.dot_dimension_numbers<[1], [0], [0], [1], [0, 0, 1, 1], [], []>} : vector<128x128xbf16>, vector<128x128xbf16>, vector<128x128xf32> -> vector<128x128xf32>
    %10 = arith.addf %6, %9 : vector<128x128xf32>
    %c0_9 = arith.constant 0 : index
    %c0_10 = arith.constant 0 : index
    %11 = vector.load %arg7[%c0_9, %c0_10] : memref<128x128xf32, #tpu.memory_space<vmem>>, vector<128x128xf32>
    tpu.vector_store %arg7[%c0_9, %c0_10], %10 {strides = array<i32>} : memref<128x128xf32, #tpu.memory_space<vmem>>, vector<128x128xf32>,
    %c1_i32 = arith.constant 1 : i32
    %12 = arith.cmpi eq, %arg1, %c1_i32 : i32
    %13 = arith.extui %12 : i1 to i32
    %c0_i32_11 = arith.constant 0 : i32
    %14 = arith.cmpi ne, %13, %c0_i32_11 : i32
    scf.if %14 {
      %c0_12 = arith.constant 0 : index
      %c0_13 = arith.constant 0 : index
      %15 = vector.load %arg7[%c0_12, %c0_13] : memref<128x128xf32, #tpu.memory_space<vmem>>, vector<128x128xf32>
      %c0_14 = arith.constant 0 : index
      %c0_15 = arith.constant 0 : index
      %16 = vector.load %arg5[%c0_14, %c0_15] : memref<1x128xf32, #tpu.memory_space<vmem>>, vector<1x128xf32>
      %17 = vector.broadcast %16 : vector<1x128xf32> to vector<128x128xf32>
      %18 = arith.addf %15, %17 : vector<128x128xf32>
      %cst_16 = arith.constant 0.000000e+00 : f32
      %19 = vector.broadcast %cst_16 : f32 to vector<128x128xf32>
      %20 = arith.maximumf %18, %19 : vector<128x128xf32>
      %c0_17 = arith.constant 0 : index
      %c0_18 = arith.constant 0 : index
      %21 = vector.load %arg6[%c0_17, %c0_18] : memref<128x128xf32, #tpu.memory_space<vmem>>, vector<128x128xf32>
      tpu.vector_store %arg6[%c0_17, %c0_18], %20 {strides = array<i32>} : memref<128x128xf32, #tpu.memory_space<vmem>>, vector<128x128xf32>,
    } else {
    }
    return
  }
  func.func @transform_0(%arg0: i32, %arg1: i32) -> (i32, i32) {
    %c0_i32 = arith.constant 0 : i32
    return %arg0, %arg1 : i32, i32
  }
  func.func @transform_1(%arg0: i32, %arg1: i32) -> (i32, i32) {
    %c0_i32 = arith.constant 0 : i32
    %c0_i32_0 = arith.constant 0 : i32
    return %arg1, %c0_i32 : i32, i32
  }
  func.func @transform_2(%arg0: i32, %arg1: i32) -> (i32, i32) {
    %c0_i32 = arith.constant 0 : i32
    %c0_i32_0 = arith.constant 0 : i32
    %c0_i32_1 = arith.constant 0 : i32
    return %c0_i32, %c0_i32_0 : i32, i32
  }
  func.func @transform_3(%arg0: i32, %arg1: i32) -> (i32, i32) {
    %c0_i32 = arith.constant 0 : i32
    %c0_i32_0 = arith.constant 0 : i32
    %c0_i32_1 = arith.constant 0 : i32
    return %c0_i32, %c0_i32_0 : i32, i32
  }
  func.func @transform_4(%arg0: i32, %arg1: i32) -> (i32, i32) {
    %c0_i32 = arith.constant 0 : i32
    %c0_i32_0 = arith.constant 0 : i32
    return %arg0, %c0_i32 : i32, i32
  }
}

</mosaic_0001>

<bundles_post_ra>
// kernel: tpu_custom_call.1
= control target key start
LH: loop header
LB: loop body
LE: loop exit
PB: predicated region body
PF: predicated region fallthrough
CT: control target
= control target key end

     0   :  { %9 = vsyncpa [#allocation4], 0  ;;  %s1597_s0 = inlined_call_operand.hbm [shape: bf16[256,256], index: 0, kind: input, shape index: {}]   ;;  %s1598_s1 = inlined_call_operand.vmem [shape: bf16[256,4], index: 1, kind: input, shape index: {}]   ;;  %s1599_s2 = inlined_call_operand.vmem [shape: bf16[4,128], index: 2, kind: input, shape index: {}]   ;;  %s1600_s3 = inlined_call_operand.vmem [shape: f32[1,128], index: 3, kind: input, shape index: {}]   ;;  %s1601_s4 = inlined_call_operand.hbm [shape: f32[256,128], index: 4, kind: output, shape index: {}]  }
   0x1   :  { %11 = vsyncpa [#allocation4 + $0x1], 0 }
   0x2   :  { %12 = vsyncpa [#allocation5], 0 }
   0x3   :  { %14 = vsyncpa [#allocation5 + $0x1], 0  ;;  %s1314_s15 = smov 0   ;;  %s1316_s16 = smov 0  }
   0x4   :  { %s1318_s17 = smov 0   ;;  %s1320_s18 = smov 0  }
   0x5   :  { %s1322_s19 = smov 0   ;;  %s1324_s20 = smov 0  }
   0x6   :  { %s1326_s21 = smov 0   ;;  %s1328_s22 = smov 0  }
   0x7   :  { %s1330_s23 = smov 0   ;;  %s1332_s24 = smov 0  }
   0x8   :  { %s1334_s25 = smov 0  }
   0x9 LB: > { %s864_s26 = sadd.s32 4294967295, %s1279_s25   ;;  %s865_s27 = sadd.s32 4294967294, %s1279_s25   ;;  %s1279_s25 = sphi %s1334_s25, %s20_s25   ;;  %s1275_s24 = sphi %s1332_s24, %s1627_s24   ;;  %s1271_s23 = sphi %s1330_s23, %s1626_s23   ;;  %s1267_s22 = sphi %s1328_s22, %s1625_s22   ;;  %s1263_s21 = sphi %s1326_s21, %s1624_s21   ;;  %s1259_s20 = sphi %s1324_s20, %s1623_s20   ;;  %s1255_s19 = sphi %s1322_s19, %s1622_s19   ;;  %s1251_s18 = sphi %s1320_s18, %s1621_s18   ;;  %s1247_s17 = sphi %s1318_s17, %s1620_s17   ;;  %s1243_s16 = sphi %s1316_s16, %s1619_s16   ;;  %s1239_s15 = sphi %s1314_s15, %s1618_s15  }
   0xa   : > { %s29_s28 = sadd.s32 1, %s1271_s23  ;;  %s32_s29 = sadd.s32 1, %s1275_s24 }
   0xb   : > { %p30_p0 = scmp.ge.s32.totalorder %s29_s28, 2  ;;  %s41_s30 = sadd.s32 1, %s1259_s20 }
   0xc   : > { %p48_p1 = scmp.ne.s32.totalorder %s1259_s20, %s1255_s19  ;;  %p49_p2 = scmp.eq.s32.totalorder %s1279_s25, 0 }
   0xd   : > { %s1629_s28 = smov (%p30_p0, %s29_s28), 0  ;;  %s1631_s29 = smov (!%p30_p0, %s32_s29), %s1275_s24 }
   0xe   : > { %1605 = sst [smem:[#allocation9_spill]] %s1629_s28  ;;  %s37_s5 = ssub.s32 %s1271_s23, %s1629_s28 }
   0xf   : > { %p1380_p3 = por %p49_p2, %p48_p1  ;;  %p34_p4 = scmp.ge.s32.totalorder %s1631_s29, 2 }
  0x10   : > { %p54_p5 = scmp.ne.s32.totalorder %s1255_s19, %s1251_s18  ;;  %p55_p6 = scmp.eq.s32.totalorder %s864_s26, 0 }
  0x11   : > { %s135_s7 = sadd.s32 1, %s1247_s17  ;;  %s1633_s29 = smov (%p34_p4, %s1631_s29), 0 }
  0x12   : > { %1607 = sst [smem:[#allocation10_spill]] %s1633_s29  ;;  %p1388_p7 = por %p55_p6, %p54_p5 }
  0x13   : > { %p145_p8 = scmp.ne.s32.totalorder %s1247_s17, %s1243_s16  ;;  %s36_s9 = ssub.s32 %s1275_s24, %s1633_s29 }
  0x14   : > { %p146_p9 = scmp.eq.s32.totalorder %s864_s26, 3  ;;  %s38_s10 = sor.u32 %s37_s5, %s36_s9 }
  0x15   : > { %p133_p10 = scmp.eq.s32.totalorder %s36_s9, 0  ;;  %p39_p11 = scmp.eq.s32.totalorder %s38_s10, 0 }
  0x16   : > { %p1396_p12 = por %p146_p9, %p145_p8  ;;  %p151_p13 = scmp.ne.s32.totalorder %s1243_s16, %s1239_s15 }
  0x17   : > { %s1401_s12 = scalar_select %p133_p10, %s1247_s17, %s135_s7  }
  0x18   : > { %s1609_s11 = scalar_select %p1396_p12, 1, 0 }
  0x19   : > { %1610 = sst [smem:[#allocation11_spill]] %s1401_s12  ;;  %p152_p0 = scmp.eq.s32.totalorder %s865_s27, 3 }
  0x1a   : > { %s1404_s13 = scalar_select %p39_p11, %s1259_s20, %s41_s30  }
  0x1b   : > { %p1015_p1 = scmp.lt.s32.totalorder %s1279_s25, 4  ;;  %p1409_p2 = por %p152_p0, %p151_p13 }
  0x1c   : > { %s178_s18 = sand.u32 1, %s1259_s20   ;;  %s909_s5 = sshll.u32 %s1275_s24, 5 }
  0x1d   : > { %s1611_s14 = scalar_select %p1409_p2, 1, 0 }
  0x1e   : > { %s868_s26 = sshll.u32 %s178_s18, 6  ;;  %s188_s9 = sadd.s32 %s1271_s23, %s909_s5 }
  0x1f   : > { %s182_s10 = scalar_lea.vmem [#allocation3], %s868_s26  ;;  %s871_s28 = sshll.u32 %s188_s9, 6 }
  0x20   : > { %s191_s29 = sshll.u32 %s182_s10, 4  ;;  %s1421_s30 = scalar_lea.hbm %s1597_s0, %s871_s28  ;;  %s1416_s29 = int_to_ptr.vmem [resolvable:$true] %s191_s29 }
  0x21   : > { %p1425_p4 = pnand %p1015_p1, %p1380_p3  ;;  %s1429_s26 = scalar_lea.sflag [#allocation4], %s178_s18 }
  0x22   : > { %s1127_s5 = scalar_lea.hbm %s1421_s30, 1024  ;;  %s1132_s12 = scalar_lea.hbm %s1597_s0, 4096 }
  0x23   : > { %p1128_p5 = scmp.ne.s32.totalorder %s1421_s30, %s1127_s5  ;;  %p1129_p6 = pneg %p1425_p4 }
  0x24   : > { %p1133_p3 = scmp.lt.u32.totalorder %s1421_s30, %s1597_s0  ;;  %p1134_p10 = scmp.lt.u32.totalorder %s1132_s12, %s1127_s5 }
  0x25   : > { %p1130_p8 = pnand %p1129_p6, %p1128_p5  ;;  %p1136_p13 = scmp.lt.u32.totalorder %s1127_s5, %s1421_s30 }
  0x26   : > { %p1135_p11 = por %p1134_p10, %p1133_p3 }
  0x27   : > { %p1131_p9 = pneg %p1130_p8 }
  0x28   : > { %p1137_p0 = por %p1136_p13, %p1135_p11 }
  0x2a   : > { %p1138_p1 = pnand %p1137_p0, %p1131_p9 }
  0x2c   : > { %1141 = shalt.err (!%p1138_p1)
}
  0x2d   : > { %s1142_s18 = scalar_lea.vmem %s1416_s29, 1024  ;;  %s1281_s7 = smov [#allocation3]  }
  0x2e   : > { %p1143_p5 = scmp.ne.s32.totalorder %s1416_s29, %s1142_s18  ;;  %s1147_s28 = sshll.u32 %s1281_s7, 4  ;;  %s1148_s28 = int_to_ptr.vmem [resolvable:$false] %s1147_s28 }
  0x2f   : > { %s1149_s6 = scalar_lea.vmem %s1148_s28, 2048  ;;  %p1150_p12 = scmp.lt.s32.totalorder %s1416_s29, %s1148_s28 }
  0x30   : > { %p1145_p8 = pnand %p1143_p5, %p1129_p6  ;;  %p1151_p3 = scmp.lt.s32.totalorder %s1149_s6, %s1142_s18 }
  0x32   : > { %p1146_p2 = pneg %p1145_p8  ;;  %p1152_p10 = por %p1151_p3, %p1150_p12 }
  0x34   : > { %p1153_p11 = pnand %p1152_p10, %p1146_p2 }
  0x36   : > { %1156 = shalt.err (!%p1153_p11)
}
  0x37   : > { %s1282_s5 = smov 128   ;;  %s1283_s12 = smov 64  }
  0x38   : > { %s1284_s9 = smov 4   ;;  %p872_p6 = scmp.ge.s32.totalorder %s1279_s25, 1 }
  0x39   : > { %1010 = dma.hbm_to_vmem [thread:$0]  (!%p1425_p4), %s1421_s30, 1024, %s1416_s29, %s1429_s26, %s1282_s5, %s1283_s12, %s1284_s9  }
  0x3a   : > { %p208_p9 = scmp.lt.s32.totalorder %s1279_s25, 5 }
  0x3c   : > { %p209_p13 = pnand %p872_p6, %p208_p9 }
  0x3d   : > { %s214_s10 = sand.u32 (!%p209_p13), 1, %s1255_s19  }
  0x3e   : > { %212 = sbr.rel (%p209_p13) target bundleno = 608 (0x260), region = 36  ;;  %s873_s18 = sshll.u32 (!%p209_p13), %s214_s10, 6 }
  0x3f   : > { %s215_s7 = scalar_lea.sflag (!%p209_p13), [#allocation4], %s214_s10  ;;  %s1460_s28 = scalar_lea.vmem (!%p209_p13), [#allocation3], %s873_s18 }
  0x45   : > { %1230 = dma.done.wait (%p1388_p7), %s215_s7, 1024  }
  0x46   : > { %1232 = vsyncadd (%p1388_p7), %s215_s7, 4294966272  ;;  %s245_s29 = sand.u32 1, %s1243_s16   ;;  %s875_s30 = sshll.u32 %s1263_s21, 4 }
  0x47   : > { %s874_s27 = sshll.u32 %s245_s29, 7  ;;  %p250_p12 = scmp.lt.s32.totalorder %s875_s30, 31 }
  0x48   : > { %s1475_s9 = scalar_lea.vmem [#allocation6], %s874_s27  ;;  %p877_p2 = scmp.ne.s32.totalorder %s1263_s21, 0 }
  0x49   : > { %s1635_s30 = smov (!%p250_p12, %s875_s30), 31  ;;  %v1285_v0 = vmov (!%p877_p2), 0.0  }
  0x4a   : > { %s876_s26 = sshll.u32 %s1635_s30, 2  ;;  %260 = sbr.rel (%p877_p2) target bundleno = 82 (0x52), region = 44  ;;  %261 = vst [vmem:[#allocation2] sm:$0xff] (!%p877_p2), %v1285_v0  ;;  %262 = vst [vmem:[#allocation2 + $0x8] sm:$0xff] (!%p877_p2), %v1285_v0 }
  0x4b   : > { %s1473_s12 = scalar_lea.vmem %s1598_s1, %s876_s26  ;;  %263 = vst [vmem:[#allocation2 + $0x10] sm:$0xff] (!%p877_p2), %v1285_v0  ;;  %264 = vst [vmem:[#allocation2 + $0x18] sm:$0xff] (!%p877_p2), %v1285_v0 }
  0x4c   : > { %265 = vst [vmem:[#allocation2 + $0x20] sm:$0xff] (!%p877_p2), %v1285_v0  ;;  %266 = vst [vmem:[#allocation2 + $0x28] sm:$0xff] (!%p877_p2), %v1285_v0 }
  0x4d   : > { %267 = vst [vmem:[#allocation2 + $0x30] sm:$0xff] (!%p877_p2), %v1285_v0  ;;  %268 = vst [vmem:[#allocation2 + $0x38] sm:$0xff] (!%p877_p2), %v1285_v0 }
  0x4e   : > { %269 = vst [vmem:[#allocation2 + $0x40] sm:$0xff] (!%p877_p2), %v1285_v0  ;;  %270 = vst [vmem:[#allocation2 + $0x48] sm:$0xff] (!%p877_p2), %v1285_v0 }
  0x4f   : > { %271 = vst [vmem:[#allocation2 + $0x50] sm:$0xff] (!%p877_p2), %v1285_v0  ;;  %272 = vst [vmem:[#allocation2 + $0x58] sm:$0xff] (!%p877_p2), %v1285_v0 }
  0x50   : > { %273 = vst [vmem:[#allocation2 + $0x60] sm:$0xff] (!%p877_p2), %v1285_v0  ;;  %274 = vst [vmem:[#allocation2 + $0x68] sm:$0xff] (!%p877_p2), %v1285_v0 }
  0x51   : > { %275 = vst [vmem:[#allocation2 + $0x70] sm:$0xff] %v1285_v0  ;;  %276 = vst [vmem:[#allocation2 + $0x78] sm:$0xff] %v1285_v0 }
  0x52 PF: > { %v293_v1 = vld [vmem:[%s1599_s2] sm:$0x3]  ;;  %vm359_vm0 = vcmask 1041408   ;;  %vm334_vm1 = vcmask 31744   ;;  %v1112_v4 = vld [vmem:[%s1473_s12 + $0x8] sm:$0xff]   ;;  %v1113_v5 = vld [vmem:[%s1473_s12 + $0x10] sm:$0xff]  }
  0x53   : > { %v1111_v2 = vld [vmem:[%s1473_s12] sm:$0xff]   ;;  %1002 = vmatprep.subr.msk.bf16.mxu0 %vm359_vm0, %v293_v1  ;;  %v361_v3 = vsel %vm359_vm0, %v293_v1, 0  ;;  %v1114_v6 = vld [vmem:[%s1473_s12 + $0x18] sm:$0xff]   ;;  %v1116_v8 = vld [vmem:[%s1473_s12 + $0x28] sm:$0xff]   ;;  %p902_p7 = scmp.ne.s32.totalorder %s1263_s21, 1 }
  0x54   : > { %937 = vmatpush3.bf16.msra.mxu0 %v361_v3  ;;  %938 = vmatprep.mubr.msk.bf16.mxu0 %vm334_vm1, %v1111_v2  ;;  %v1115_v7 = vld [vmem:[%s1473_s12 + $0x20] sm:$0xff]   ;;  %v1117_v9 = vld [vmem:[%s1473_s12 + $0x30] sm:$0xff]   ;;  %v1118_v10 = vld [vmem:[%s1473_s12 + $0x38] sm:$0xff]  }
  0x55   : > { %v1119_v11 = vld [vmem:[%s1460_s28 + $0x10] sm:$0xff]   ;;  %v1123_v12 = vld [vmem:[%s1460_s28] sm:$0xff]   ;;  %v1120_v37 = vld [vmem:[%s1460_s28 + $0x18] sm:$0xff]  }
  0x56   : > { %974 = vmatprep.mubr.bf16.mxu1 %v1119_v11  ;;  %v1124_v38 = vld [vmem:[%s1460_s28 + $0x8] sm:$0xff]   ;;  %v1121_v39 = vld [vmem:[%s1460_s28 + $0x20] sm:$0xff]   ;;  %v1125_v41 = vld [vmem:[%s1460_s28 + $0x30] sm:$0xff]  }
  0x57   : > { %939 = vmatmul.mubr.msk.bf16.vlgmr.msra.gmra.mrb[0].mxu0 %vm334_vm1, %v1112_v4  ;;  %v1122_v40 = vld [vmem:[%s1460_s28 + $0x28] sm:$0xff]   ;;  %v1126_v42 = vld [vmem:[%s1460_s28 + $0x38] sm:$0xff]   ;;  %v466_v43 = vld [vmem:[#allocation2 + $0x30] sm:$0xff] }
  0x58   : > { %942 = vmatprep.mubr.msk.bf16.mxu0 %vm334_vm1, %v1113_v5  ;;  %v462_v44 = vld [vmem:[#allocation2 + $0x10] sm:$0xff]  ;;  %v464_v45 = vld [vmem:[#allocation2 + $0x20] sm:$0xff]  ;;  %v467_v48 = vld [vmem:[#allocation2 + $0x38] sm:$0xff] }
  0x59   : > { %v460_v46 = vld [vmem:[#allocation2] sm:$0xff]  ;;  %v463_v50 = vld [vmem:[#allocation2 + $0x18] sm:$0xff]  ;;  %v465_v53 = vld [vmem:[#allocation2 + $0x28] sm:$0xff] }
  0x5a   : > { %v461_v56 = vld [vmem:[#allocation2 + $0x8] sm:$0xff]  ;;  %v470_v3 = vld [vmem:[#allocation2 + $0x50] sm:$0xff]  ;;  %v468_v4 = vld [vmem:[#allocation2 + $0x40] sm:$0xff] }
  0x5f   : > { %943 = vmatmul.mubr.msk.bf16.gmra.mrb[4].mxu0 %vm334_vm1, %v1114_v6  ;;  %v471_v6 = vld [vmem:[#allocation2 + $0x58] sm:$0xff] }
  0x60   : > { %946 = vmatprep.mubr.msk.bf16.mxu0 %vm334_vm1, %v1115_v7 }
  0x67   : > { %947 = vmatmul.mubr.msk.bf16.gmra.mrb[8].mxu0 %vm334_vm1, %v1116_v8 }
  0x68   : > { %950 = vmatprep.mubr.msk.bf16.mxu0 %vm334_vm1, %v1117_v9  ;;  %v469_v9 = vld [vmem:[#allocation2 + $0x48] sm:$0xff] }
  0x6f   : > { %951 = vmatmul.mubr.msk.bf16.gmra.mrb[12].mxu0 %vm334_vm1, %v1118_v10 }
  0x70   : > { %970 = vmatprep.mubr.bf16.mxu0 %v1123_v12 }
 0x12a   : > { %v940_v13 = vpop.f32.mrb[0].mxu0 }
 0x12b   : > { %v397_v14 = vpop.f32.mrb[1].mxu0 }
 0x12c   : > { %v941_v15 = vpop.f32.mrb[2].mxu0 }
 0x12d   : > { %v493_v16 = vpack.c.bf16 %v941_v15, %v940_v13  ;;  %v400_v17 = vpop.f32.mrb[3].mxu0  ;;  %v474_v15 = vld [vmem:[#allocation2 + $0x70] sm:$0xff] }
 0x12e   : > { %v492_v18 = vpack.c.bf16 %v400_v17, %v397_v14 }
 0x130   : > { %954 = vmatprep.subr.bf16.mxu0 %v492_v18  ;;  %986 = vmatprep.subr.bf16.mxu1 %v492_v18 }
 0x131   : > { %955 = vmatpush3.bf16.msra.mxu0 %v492_v18  ;;  %994 = vmatpush3.bf16.msra.mxu1 %v492_v18  ;;  %v475_v18 = vld [vmem:[#allocation2 + $0x78] sm:$0xff] }
 0x132   : > { %v944_v19 = vpop.f32.mrb[4].mxu0  ;;  %956 = vmatprep.subr.bf16.mxu0 %v493_v16  ;;  %987 = vmatprep.subr.bf16.mxu1 %v493_v16 }
 0x133   : > { %v413_v20 = vpop.f32.mrb[5].mxu0 }
 0x134   : > { %v945_v21 = vpop.f32.mrb[6].mxu0 }
 0x135   : > { %v495_v22 = vpack.c.bf16 %v945_v21, %v944_v19  ;;  %v416_v23 = vpop.f32.mrb[7].mxu0  ;;  %957 = vmatpush3.bf16.msra.mxu0 %v493_v16  ;;  %995 = vmatpush3.bf16.msra.mxu1 %v493_v16  ;;  %v472_v16 = vld [vmem:[#allocation2 + $0x60] sm:$0xff]  ;;  %v473_v21 = vld [vmem:[#allocation2 + $0x68] sm:$0xff] }
 0x136   : > { %v494_v24 = vpack.c.bf16 %v416_v23, %v413_v20 }
 0x138   : > { %958 = vmatprep.subr.bf16.mxu0 %v494_v24  ;;  %988 = vmatprep.subr.bf16.mxu1 %v494_v24 }
 0x139   : > { %959 = vmatpush3.bf16.msra.mxu0 %v494_v24  ;;  %996 = vmatpush3.bf16.msra.mxu1 %v494_v24 }
 0x13a   : > { %v948_v25 = vpop.f32.mrb[8].mxu0  ;;  %960 = vmatprep.subr.bf16.mxu0 %v495_v22  ;;  %989 = vmatprep.subr.bf16.mxu1 %v495_v22 }
 0x13b   : > { %v429_v26 = vpop.f32.mrb[9].mxu0 }
 0x13c   : > { %v949_v27 = vpop.f32.mrb[10].mxu0 }
 0x13d   : > { %v497_v28 = vpack.c.bf16 %v949_v27, %v948_v25  ;;  %v432_v29 = vpop.f32.mrb[11].mxu0  ;;  %961 = vmatpush3.bf16.msra.mxu0 %v495_v22  ;;  %997 = vmatpush3.bf16.msra.mxu1 %v495_v22 }
 0x13e   : > { %v496_v30 = vpack.c.bf16 %v432_v29, %v429_v26 }
 0x140   : > { %962 = vmatprep.subr.bf16.mxu0 %v496_v30  ;;  %990 = vmatprep.subr.bf16.mxu1 %v496_v30 }
 0x141   : > { %963 = vmatpush3.bf16.msra.mxu0 %v496_v30  ;;  %998 = vmatpush3.bf16.msra.mxu1 %v496_v30 }
 0x142   : > { %v952_v31 = vpop.f32.mrb[12].mxu0  ;;  %964 = vmatprep.subr.bf16.mxu0 %v497_v28  ;;  %991 = vmatprep.subr.bf16.mxu1 %v497_v28 }
 0x143   : > { %v445_v32 = vpop.f32.mrb[13].mxu0 }
 0x144   : > { %v953_v33 = vpop.f32.mrb[14].mxu0 }
 0x145   : > { %v499_v34 = vpack.c.bf16 %v953_v33, %v952_v31  ;;  %v448_v35 = vpop.f32.mrb[15].mxu0  ;;  %965 = vmatpush3.bf16.msra.mxu0 %v497_v28  ;;  %999 = vmatpush3.bf16.msra.mxu1 %v497_v28  ;;  %v903_v28 = vld [vmem:[%s1600_s3] ss:$0 sm:$0xff] (!%p902_p7) }
 0x146   : > { %v498_v36 = vpack.c.bf16 %v448_v35, %v445_v32 }
 0x148   : > { %966 = vmatprep.subr.bf16.mxu0 %v498_v36  ;;  %992 = vmatprep.subr.bf16.mxu1 %v498_v36 }
 0x149   : > { %967 = vmatpush3.bf16.msra.mxu0 %v498_v36  ;;  %1000 = vmatpush3.bf16.msra.mxu1 %v498_v36 }
 0x14a   : > { %968 = vmatprep.subr.bf16.mxu0 %v499_v34  ;;  %993 = vmatprep.subr.bf16.mxu1 %v499_v34 }
 0x14d   : > { %969 = vmatpush3.bf16.msra.mxu0 %v499_v34  ;;  %1001 = vmatpush3.bf16.msra.mxu1 %v499_v34 }
 0x150   : > { %975 = vmatmul.mubr.bf16.vlgmr.msra.gmra.mrb[0].mxu1 %v1120_v37  ;;  %971 = vmatmul.mubr.bf16.vlgmr.msra.gmra.mrb[16].mxu0 %v1124_v38 }
 0x151   : > { %978 = vmatprep.mubr.bf16.mxu1 %v1121_v39 }
 0x158   : > { %979 = vmatmul.mubr.bf16.gmra.mrb[4].mxu1 %v1122_v40 }
 0x159   : > { %982 = vmatprep.mubr.bf16.mxu1 %v1125_v41 }
 0x160   : > { %983 = vmatmul.mubr.bf16.gmra.mrb[8].mxu1 %v1126_v42 }
 0x223   : > { %v976_v47 = vpop.f32.mrb[0].mxu1  ;;  %v972_v49 = vpop.f32.mrb[16].mxu0 }
 0x224   : > { %v651_v51 = vadd.f32 %v976_v47, %v466_v43  ;;  %v598_v52 = vpop.f32.mrb[1].mxu1  ;;  %v647_v54 = vadd.f32 %v972_v49, %v462_v44  ;;  %v582_v55 = vpop.f32.mrb[17].mxu0 }
 0x225   : > { %v649_v57 = vadd.f32 %v598_v52, %v464_v45  ;;  %v977_v58 = vpop.f32.mrb[2].mxu1  ;;  %v645_v59 = vadd.f32 %v582_v55, %v460_v46  ;;  %v973_v60 = vpop.f32.mrb[18].mxu0 }
 0x226   : > { %667 = vst [vmem:[#allocation2 + $0x30] sm:$0xff] %v651_v51  ;;  %v652_v61 = vadd.f32 %v977_v58, %v467_v48  ;;  %v601_v62 = vpop.f32.mrb[3].mxu1  ;;  %663 = vst [vmem:[#allocation2 + $0x10] sm:$0xff] %v647_v54  ;;  %v648_v63 = vadd.f32 %v973_v60, %v463_v50  ;;  %v585_v0 = vpop.f32.mrb[19].mxu0 }
 0x227   : > { %665 = vst [vmem:[#allocation2 + $0x20] sm:$0xff] %v649_v57  ;;  %v650_v1 = vadd.f32 %v601_v62, %v465_v53  ;;  %661 = vst [vmem:[#allocation2] sm:$0xff] %v645_v59  ;;  %v646_v2 = vadd.f32 %v585_v0, %v461_v56 }
 0x228   : > { %668 = vst [vmem:[#allocation2 + $0x38] sm:$0xff] %v652_v61  ;;  %664 = vst [vmem:[#allocation2 + $0x18] sm:$0xff] %v648_v63 }
 0x229   : > { %666 = vst [vmem:[#allocation2 + $0x28] sm:$0xff] %v650_v1  ;;  %662 = vst [vmem:[#allocation2 + $0x8] sm:$0xff] %v646_v2 }
 0x22b   : > { %v980_v5 = vpop.f32.mrb[4].mxu1 }
 0x22c   : > { %v655_v7 = vadd.f32 %v980_v5, %v470_v3  ;;  %v614_v8 = vpop.f32.mrb[5].mxu1 }
 0x22d   : > { %v653_v10 = vadd.f32 %v614_v8, %v468_v4  ;;  %v981_v11 = vpop.f32.mrb[6].mxu1  ;;  %v683_v32 = vld [vmem:[#allocation2 + $0x10] sm:$0xff] (!%p902_p7) }
 0x22e   : > { %671 = vst [vmem:[#allocation2 + $0x50] sm:$0xff] %v655_v7  ;;  %v656_v12 = vadd.f32 %v981_v11, %v471_v6  ;;  %v617_v13 = vpop.f32.mrb[7].mxu1  ;;  %v681_v27 = vld [vmem:[#allocation2] sm:$0xff] (!%p902_p7)  ;;  %v706_v35 = vadd.f32 (!%p902_p7), %v903_v28, %v683_v32  ;;  %v687_v39 = vld [vmem:[#allocation2 + $0x30] sm:$0xff] (!%p902_p7) }
 0x22f   : > { %669 = vst [vmem:[#allocation2 + $0x40] sm:$0xff] %v653_v10  ;;  %v654_v14 = vadd.f32 %v617_v13, %v469_v9  ;;  %v704_v30 = vadd.f32 (!%p902_p7), %v903_v28, %v681_v27  ;;  %v684_v33 = vld [vmem:[#allocation2 + $0x18] sm:$0xff] (!%p902_p7)  ;;  %v685_v34 = vld [vmem:[#allocation2 + $0x20] sm:$0xff] (!%p902_p7)  ;;  %v710_v44 = vadd.f32 (!%p902_p7), %v903_v28, %v687_v39 }
 0x230   : > { %672 = vst [vmem:[#allocation2 + $0x58] sm:$0xff] %v656_v12  ;;  %v682_v29 = vld [vmem:[#allocation2 + $0x8] sm:$0xff] (!%p902_p7)  ;;  %v707_v36 = vadd.f32 (!%p902_p7), %v903_v28, %v684_v33  ;;  %v708_v37 = vadd.f32 (!%p902_p7), %v903_v28, %v685_v34  ;;  %v688_v40 = vld [vmem:[#allocation2 + $0x38] sm:$0xff] (!%p902_p7)  ;;  %v722_v48 = vmax.f32 (!%p902_p7), %v706_v35, 0.0 }
 0x231   : > { %670 = vst [vmem:[#allocation2 + $0x48] sm:$0xff] %v654_v14  ;;  %v705_v31 = vadd.f32 (!%p902_p7), %v903_v28, %v682_v29  ;;  %v686_v38 = vld [vmem:[#allocation2 + $0x28] sm:$0xff] (!%p902_p7)  ;;  %v720_v41 = vmax.f32 (!%p902_p7), %v704_v30, 0.0  ;;  %v711_v51 = vadd.f32 (!%p902_p7), %v903_v28, %v688_v40  ;;  %v726_v56 = vmax.f32 (!%p902_p7), %v710_v44, 0.0 }
 0x232   : > { %v709_v43 = vadd.f32 (!%p902_p7), %v903_v28, %v686_v38  ;;  %v723_v49 = vmax.f32 (!%p902_p7), %v707_v36, 0.0  ;;  %v724_v50 = vmax.f32 (!%p902_p7), %v708_v37, 0.0  ;;  %738 = vst [vmem:[%s1475_s9 + $0x10] sm:$0xff] (!%p902_p7), %v722_v48 }
 0x233   : > { %v984_v17 = vpop.f32.mrb[8].mxu1  ;;  %680 = sbr.rel (%p902_p7) target bundleno = 582 (0x246), region = 48  ;;  %v721_v42 = vmax.f32 (!%p902_p7), %v705_v31, 0.0  ;;  %736 = vst [vmem:[%s1475_s9] sm:$0xff] (!%p902_p7), %v720_v41  ;;  %v727_v61 = vmax.f32 (!%p902_p7), %v711_v51, 0.0  ;;  %742 = vst [vmem:[%s1475_s9 + $0x30] sm:$0xff] (!%p902_p7), %v726_v56 }
 0x234   : > { %v659_v19 = vadd.f32 %v984_v17, %v474_v15  ;;  %v630_v20 = vpop.f32.mrb[9].mxu1  ;;  %v725_v55 = vmax.f32 (!%p902_p7), %v709_v43, 0.0  ;;  %739 = vst [vmem:[%s1475_s9 + $0x18] sm:$0xff] (!%p902_p7), %v723_v49  ;;  %740 = vst [vmem:[%s1475_s9 + $0x20] sm:$0xff] (!%p902_p7), %v724_v50 }
 0x235   : > { %v657_v22 = vadd.f32 %v630_v20, %v472_v16  ;;  %v985_v23 = vpop.f32.mrb[10].mxu1  ;;  %v691_v47 = vld [vmem:[#allocation2 + $0x50] sm:$0xff] (!%p902_p7)  ;;  %737 = vst [vmem:[%s1475_s9 + $0x8] sm:$0xff] (!%p902_p7), %v721_v42  ;;  %743 = vst [vmem:[%s1475_s9 + $0x38] sm:$0xff] (!%p902_p7), %v727_v61 }
 0x236   : > { %675 = vst [vmem:[#allocation2 + $0x70] sm:$0xff] %v659_v19  ;;  %v660_v24 = vadd.f32 %v985_v23, %v475_v18  ;;  %v633_v25 = vpop.f32.mrb[11].mxu1  ;;  %v689_v45 = vld [vmem:[#allocation2 + $0x40] sm:$0xff] (!%p902_p7)  ;;  %v714_v62 = vadd.f32 (!%p902_p7), %v903_v28, %v691_v47  ;;  %741 = vst [vmem:[%s1475_s9 + $0x28] sm:$0xff] (!%p902_p7), %v725_v55 }
 0x237   : > { %673 = vst [vmem:[#allocation2 + $0x60] sm:$0xff] %v657_v22  ;;  %v658_v26 = vadd.f32 %v633_v25, %v473_v21  ;;  %v692_v52 = vld [vmem:[#allocation2 + $0x58] sm:$0xff] (!%p902_p7)  ;;  %v712_v57 = vadd.f32 (!%p902_p7), %v903_v28, %v689_v45 }
 0x238   : > { %676 = vst [vmem:[#allocation2 + $0x78] sm:$0xff] %v660_v24  ;;  %v690_v46 = vld [vmem:[#allocation2 + $0x48] sm:$0xff] (!%p902_p7)  ;;  %v715_v63 = vadd.f32 (!%p902_p7), %v903_v28, %v692_v52  ;;  %v730_v5 = vmax.f32 (!%p902_p7), %v714_v62, 0.0 }
 0x239   : > { %674 = vst [vmem:[#allocation2 + $0x68] sm:$0xff] %v658_v26  ;;  %v713_v58 = vadd.f32 (!%p902_p7), %v903_v28, %v690_v46  ;;  %v728_v1 = vmax.f32 (!%p902_p7), %v712_v57, 0.0 }
 0x23a   : > { %v731_v6 = vmax.f32 %v715_v63, 0.0  ;;  %746 = vst [vmem:[%s1475_s9 + $0x50] sm:$0xff] %v730_v5 }
 0x23b   : > { %v729_v2 = vmax.f32 %v713_v58, 0.0  ;;  %744 = vst [vmem:[%s1475_s9 + $0x40] sm:$0xff] %v728_v1 }
 0x23c   : > { %747 = vst [vmem:[%s1475_s9 + $0x58] sm:$0xff] %v731_v6 }
 0x23d   : > { %v695_v59 = vld [vmem:[#allocation2 + $0x70] sm:$0xff]  ;;  %745 = vst [vmem:[%s1475_s9 + $0x48] sm:$0xff] %v729_v2 }
 0x23e   : > { %v693_v53 = vld [vmem:[#allocation2 + $0x60] sm:$0xff]  ;;  %v718_v4 = vadd.f32 %v903_v28, %v695_v59 }
 0x23f   : > { %v696_v60 = vld [vmem:[#allocation2 + $0x78] sm:$0xff]  ;;  %v716_v0 = vadd.f32 %v903_v28, %v693_v53 }
 0x240   : > { %v694_v54 = vld [vmem:[#allocation2 + $0x68] sm:$0xff]  ;;  %v719_v8 = vadd.f32 %v903_v28, %v696_v60  ;;  %v734_v10 = vmax.f32 %v718_v4, 0.0 }
 0x241   : > { %v717_v3 = vadd.f32 %v903_v28, %v694_v54  ;;  %v732_v7 = vmax.f32 %v716_v0, 0.0 }
 0x242   : > { %v735_v11 = vmax.f32 %v719_v8, 0.0  ;;  %750 = vst [vmem:[%s1475_s9 + $0x70] sm:$0xff] %v734_v10 }
 0x243   : > { %v733_v9 = vmax.f32 %v717_v3, 0.0  ;;  %748 = vst [vmem:[%s1475_s9 + $0x60] sm:$0xff] %v732_v7 }
 0x244   : > { %751 = vst [vmem:[%s1475_s9 + $0x78] sm:$0xff] %v735_v11 }
 0x245   : > { %749 = vst [vmem:[%s1475_s9 + $0x68] sm:$0xff] %v733_v9 }
 0x246 PF: > { %s910_s21 = sshll.u32 %s1267_s22, 11  ;;  %s766_s26 = sshll.u32 %s1475_s9, 4  ;;  %s1532_s26 = int_to_ptr.vmem [resolvable:$true] %s766_s26 }
 0x247   : > { %s1529_s27 = scalar_lea.hbm %s1601_s4, %s910_s21  ;;  %s1536_s6 = scalar_lea.sflag [#allocation5], %s245_s29 }
 0x248   : > { %s1157_s5 = scalar_lea.vmem %s1532_s26, 2048  ;;  %p1613_p0 = scmp.ne.s32.totalorder %s1609_s11, 0 }
 0x249   : > { %p1158_p4 = scmp.ne.s32.totalorder %s1532_s26, %s1157_s5  ;;  %s1286_s22 = smov [#allocation6]  }
 0x24a   : > { %s1161_s12 = sshll.u32 %s1286_s22, 4  ;;  %s1162_s12 = int_to_ptr.vmem [resolvable:$false] %s1161_s12 }
 0x24b   : > { %p1159_p1 = pnand %p1158_p4, %p1613_p0  ;;  %s1163_s8 = scalar_lea.vmem %s1162_s12, 4096 }
 0x24c   : > { %p1164_p8 = scmp.lt.s32.totalorder %s1532_s26, %s1162_s12  ;;  %p1165_p3 = scmp.lt.s32.totalorder %s1163_s8, %s1157_s5 }
 0x24d   : > { %p1160_p5 = pneg %p1159_p1 }
 0x24e   : > { %p1166_p10 = por %p1165_p3, %p1164_p8 }
 0x250   : > { %p1167_p11 = pnand %p1166_p10, %p1160_p5 }
 0x252   : > { %1170 = shalt.err (!%p1167_p11)
}
 0x253   : > { %s1171_s29 = scalar_lea.hbm %s1529_s27, 2048  ;;  %s1175_s18 = scalar_lea.hbm %s1601_s4, 4096 }
 0x254   : > { %p1172_p6 = scmp.ne.s32.totalorder %s1529_s27, %s1171_s29  ;;  %p1176_p12 = scmp.lt.u32.totalorder %s1529_s27, %s1601_s4 }
 0x255   : > { %p1177_p2 = scmp.lt.u32.totalorder %s1175_s18, %s1171_s29  ;;  %p1179_p4 = scmp.lt.u32.totalorder %s1171_s29, %s1529_s27 }
 0x256   : > { %p1173_p9 = pnand %p1172_p6, %p1613_p0 }
 0x257   : > { %p1178_p7 = por %p1177_p2, %p1176_p12 }
 0x258   : > { %p1174_p13 = pneg %p1173_p9 }
 0x259   : > { %p1180_p1 = por %p1179_p4, %p1178_p7 }
 0x25b   : > { %p1181_p5 = pnand %p1180_p1, %p1174_p13 }
 0x25d   : > { %1184 = shalt.err (!%p1181_p5)
}
 0x25e   : > { %s1287_s28 = smov 128   ;;  %s1288_s30 = smov 8  }
 0x25f   : > { %1005 = dma.vmem_to_hbm [thread:$0]  (%p1613_p0), %s1532_s26, 2048, %s1529_s27, %s1536_s6, %s1287_s28, %s1287_s28, %s1288_s30  }
 0x260 PF: > { %p1016_p8 = scmp.ge.s32.totalorder %s1279_s25, 2  ;;  %s781_s5 = sand.u32 1, %s1239_s15  }
 0x261   : > { %p1614_p3 = scmp.ne.s32.totalorder %s1611_s14, 0  ;;  %s782_s22 = scalar_lea.sflag [#allocation5], %s781_s5 }
 0x263   : > { %p1012_p10 = pnand %p1016_p8, %p1614_p3 }
 0x265   : > { %1234 = dma.done.wait (!%p1012_p10), %s782_s22, 2048  }
 0x266   : > { %1236 = vsyncadd (!%p1012_p10), %s782_s22, 4294965248  ;;  %s20_s25 = sadd.s32 1, %s1279_s25   ;;  %s1615_s12 = sld [smem:[#allocation11_spill]] }
 0x267   : > { %p17_p11 = scmp.ge.s32.totalorder %s20_s25, 6   ;;  %s1616_s11 = sld [smem:[#allocation9_spill]] }
 0x268   : > { %s1617_s27 = sld [smem:[#allocation10_spill]]  ;;  %s1618_s15 = smov %s1243_s16 }
 0x269   : > { %s1619_s16 = smov %s1247_s17  ;;  %s1621_s18 = smov %s1255_s19 }
 0x26a   : > { %s1622_s19 = smov %s1259_s20  ;;  %s1623_s20 = smov %s1404_s13 }
 0x26b   : > { %s1624_s21 = smov %s1271_s23  ;;  %s1625_s22 = smov %s1275_s24 }
 0x26c   : > { %s1620_s17 = smov %s1615_s12  ;;  %19 = sbr.rel (!%p17_p11) target bundleno = 9 (0x9), region = 92 }
 0x26d   : > { %s1626_s23 = smov %s1616_s11 }
 0x26e   : > { %s1627_s24 = smov %s1617_s27 }
 0x273   :  { %787 = vsyncpa [#allocation4], 1 }
 0x274   :  { %789 = vsyncpa [#allocation4 + $0x1], 1 }
 0x275   :  { %790 = vsyncpa [#allocation5], 1 }
 0x276   :  { %792 = vsyncpa [#allocation5 + $0x1], 1 }

</bundles_post_ra>
